<compile_context>
chip_gen: v5e
topology: v5e:2x2
jax: 0.10.0
libtpu: 0.0.40
codegen_flags: <defaults>
</compile_context>

<pallas_src>
import functools

import jax
import jax.numpy as jnp
from jax import lax
from jax.experimental import pallas as pl
from jax.experimental.pallas import tpu as pltpu

_LANES = 128
_SUBLANES = 8
_MAX_ROWS_PER_TILE = 1024            # 3 * 1024 * 128 * 4 B = 1.5 MiB per input buffer
_SUB_ROW_CANDIDATES = (32, 24, 16, 8)  # inner sub-block heights (register-resident)


def _round_up(x: int, m: int) -> int:
    return -(-x // m) * m


def _nps_kernel(trip_ref, patch_ref, out_ref, *, n_valid, sub_rows, needs_mask,
                last_tile):
    """Per-tile partial sums of the min-over-triplets color distance.

    trip_ref  : (3*N,) f32 SMEM      -- printable triplets, flattened, eps pre-folded
    patch_ref : (3, R, 128) f32 VMEM -- lane-dense tile of the flattened patch
    out_ref   : (8, 128) f32 VMEM    -- this tile's partial sums (reduced on host)
    """
    i = pl.program_id(0)
    rows = patch_ref.shape[1]
    n_sub = rows // sub_rows
    n_trip = trip_ref.shape[0] // 3

    # Hoist SMEM scalar reads out of the hot loop (scalar slots, ~free).
    tvals = [trip_ref[k] for k in range(3 * n_trip)]

    def tile_partial(masked):
        if masked:
            # Flattened index of each element within one sub-block (loop
            # invariant); compared against a per-sub-block scalar limit.
            local_idx = (
                lax.broadcasted_iota(jnp.int32, (sub_rows, _LANES), 0) * _LANES
                + lax.broadcasted_iota(jnp.int32, (sub_rows, _LANES), 1))
            tile_base = i * (rows * _LANES)

        acc = jnp.zeros((_SUBLANES, _LANES), jnp.float32)
        for s in range(n_sub):
            r0 = s * sub_rows
            pr = patch_ref[0, pl.ds(r0, sub_rows), :]
            pg = patch_ref[1, pl.ds(r0, sub_rows), :]
            pb = patch_ref[2, pl.ds(r0, sub_rows), :]

            def ssq(n):
                b3 = 3 * n
                dr = pr - tvals[b3 + 0]
                dg = pg - tvals[b3 + 1]
                db = pb - tvals[b3 + 2]
                return dr * dr + dg * dg + db * db

            # Running min over triplets; no (N, ...) intermediate.
            m = ssq(0)
            for n in range(1, n_trip):
                m = jnp.minimum(m, ssq(n))

            # '+1e-6' hoisted out of the min (exact: min_n(x_n + c) == min_n x_n + c)
            # and sqrt hoisted past the min (monotone => exact).
            d = jnp.sqrt(m + 1e-6)                       # (sub_rows, 128)

            if masked:
                limit = (n_valid - r0 * _LANES) - tile_base   # traced scalar
                d = jnp.where(local_idx < limit, d, 0.0)

            # Fold sub_rows -> 8 sublanes with a few vreg adds.
            folded = d[0:_SUBLANES, :]
            for b in range(1, sub_rows // _SUBLANES):
                folded = folded + d[b * _SUBLANES:(b + 1) * _SUBLANES, :]
            acc = acc + folded
        return acc

    if not needs_mask:
        out_ref[...] = tile_partial(False)
    elif last_tile == 0:
        out_ref[...] = tile_partial(True)          # single-tile grid: always masked
    else:
        is_last = i == last_tile

        @pl.when(is_last)
        def _():
            out_ref[...] = tile_partial(True)

        @pl.when(jnp.logical_not(is_last))
        def _():
            out_ref[...] = tile_partial(False)


def nps_loss(adv_patch: jax.Array, triplets: jax.Array, *, rows_per_tile=None):
    """adv_patch: (3, H, W) f32; triplets: (N, 3) printable colors -> scalar f32."""
    c, h, w = adv_patch.shape
    assert c == 3, "adv_patch must be (3, H, W)"
    total = h * w

    # Lane-dense flatten: (3, H, W) -> (3, rows, 128). Pad the flattened spatial
    # axis only up to the next multiple of 8*128 (<= 1023 extra elements); any
    # ragged last grid block is covered by the in-kernel mask.
    l_pad = _round_up(total, _SUBLANES * _LANES)
    rows_arr = l_pad // _LANES

    patch_flat = adv_patch.astype(jnp.float32).reshape(3, total)
    if l_pad != total:
        patch_flat = jnp.pad(patch_flat, ((0, 0), (0, l_pad - total)))
    patch_tiled = patch_flat.reshape(3, rows_arr, _LANES)

    if rows_per_tile is None:
        # Few, large tiles (per-grid-step overhead ~0.35 us); at least 2 steps so
        # the "parallel" axis can be split across both v7x TensorCores, at most
        # 1024 rows (~1.5 MiB/buffer) to stay well inside VMEM on every generation.
        n_steps = max(pl.cdiv(rows_arr, _MAX_ROWS_PER_TILE),
                      2 if rows_arr >= 2 * _SUBLANES else 1)
        rows_per_tile = _round_up(pl.cdiv(rows_arr, n_steps), _SUBLANES)
    else:
        rows_per_tile = max(_SUBLANES, _round_up(int(rows_per_tile), _SUBLANES))
        rows_per_tile = min(rows_per_tile, rows_arr)

    grid = pl.cdiv(rows_arr, rows_per_tile)
    needs_mask = (grid * rows_per_tile * _LANES) != total
    sub_rows = next(s for s in _SUB_ROW_CANDIDATES if rows_per_tile % s == 0)

    # Fold the per-channel '+1e-6' into the triplet constants (host side):
    # p - t + 1e-6 == p - (t - 1e-6) to within 1 ulp.
    trip_flat = (jnp.asarray(triplets, jnp.float32) - jnp.float32(1e-6)).reshape(-1)

    kernel = functools.partial(
        _nps_kernel, n_valid=total, sub_rows=sub_rows, needs_mask=needs_mask,
        last_tile=grid - 1)

    partials = pl.pallas_call(
        kernel,
        out_shape=jax.ShapeDtypeStruct((grid, _SUBLANES, _LANES), jnp.float32),
        grid=(grid,),
        in_specs=[
            pl.BlockSpec(memory_space=pltpu.MemorySpace.SMEM),            # triplets
            pl.BlockSpec((3, rows_per_tile, _LANES), lambda i: (0, i, 0)),
        ],
        out_specs=pl.BlockSpec((None, _SUBLANES, _LANES), lambda i: (i, 0, 0)),
        compiler_params=pltpu.CompilerParams(
            dimension_semantics=("parallel",),   # independent per-tile partials
        ),
    )(trip_flat, patch_tiled)

    # Tiny epilogue: cross-tile/lane reduce + normalization.
    return jnp.sum(partials) / jnp.float32(3 * h * w)


def make_printability_array(triplets, size):
    """Deterministic stand-in for get_printability_array (no file I/O).

    Only needed for the pure-JAX reference; the kernel consumes raw triplets.
    """
    p_h, p_w = size
    t = jnp.asarray(triplets, dtype=jnp.float32)  # (N, 3)
    return jnp.broadcast_to(t[:, :, None, None], (t.shape[0], 3, p_h, p_w)).astype(
        jnp.float32
    )


def nps_loss_reference(adv_patch, printability_array):
    """Pure-JAX reference mirroring the PyTorch forward exactly."""
    color_dist = adv_patch[None] - printability_array + 1e-6
    color_dist = color_dist**2
    color_dist = jnp.sum(color_dist, axis=1) + 1e-6
    color_dist = jnp.sqrt(color_dist)
    color_dist_prod = jnp.min(color_dist, axis=0)
    nps_score = jnp.sum(color_dist_prod, axis=0)
    nps_score = jnp.sum(nps_score, axis=0)
    return nps_score / adv_patch.size


if __name__ == "__main__":
    # TODO(synk): CSV triplet loading (file I/O) stays host-side, outside the kernel.
    triplets = jnp.array(
        [
            [0.10, 0.10, 0.10],
            [0.90, 0.10, 0.10],
            [0.10, 0.90, 0.10],
            [0.10, 0.10, 0.90],
            [0.90, 0.90, 0.10],
            [0.90, 0.10, 0.90],
            [0.10, 0.90, 0.90],
            [0.80, 0.80, 0.80],
        ],
        dtype=jnp.float32,
    )

    key = jax.random.PRNGKey(0)
    k1, k2, k3 = jax.random.split(key, 3)

    # Test 1: (3, 16, 16) -- single masked tile, heavy lane/row padding.
    H1, W1 = 16, 16
    patch1 = jax.random.uniform(k1, (3, H1, W1), dtype=jnp.float32)
    out1 = jax.block_until_ready(nps_loss(patch1, triplets))
    ref1 = nps_loss_reference(patch1, make_printability_array(triplets, (H1, W1)))
    assert jnp.allclose(out1, ref1, rtol=1e-5, atol=1e-6), (out1, ref1)

    # Test 2: (3, 48, 48) with a tiny tile override -- multi-step grid with
    # interior (unmasked) tiles plus a masked/ragged last tile.
    H2, W2 = 48, 48
    patch2 = jax.random.uniform(k2, (3, H2, W2), dtype=jnp.float32)
    out2 = jax.block_until_ready(nps_loss(patch2, triplets, rows_per_tile=8))
    ref2 = nps_loss_reference(patch2, make_printability_array(triplets, (H2, W2)))
    assert jnp.allclose(out2, ref2, rtol=1e-5, atol=1e-6), (out2, ref2)

    # Test 3: (3, 40, 64) with default auto-tiling -- exercises the >=2-step
    # "parallel" grid (megacore path) and the last-tile-only masking branch.
    H3, W3 = 40, 64
    patch3 = jax.random.uniform(k3, (3, H3, W3), dtype=jnp.float32)
    out3 = jax.block_until_ready(nps_loss(patch3, triplets))
    ref3 = nps_loss_reference(patch3, make_printability_array(triplets, (H3, W3)))
    assert jnp.allclose(out3, ref3, rtol=1e-5, atol=1e-6), (out3, ref3)

    print("KERNEL_OK")
</pallas_src>

<mosaic_0001>
module attributes {stable_mosaic.version = 11 : i64} {
  func.func @_nps_kernel(%arg0: i32, %arg1: memref<24xf32, #tpu.memory_space<smem>>, %arg2: memref<3x8x128xf32, #tpu.memory_space<vmem>>, %arg3: memref<1x8x128xf32, #tpu.memory_space<vmem>>) attributes {dimension_semantics = [#tpu.dimension_semantics<parallel>], iteration_bounds = array<i64: 1>, scalar_prefetch = 0 : i64, scratch_operands = 0 : i64, tpu.core_type = #tpu.core_type<tc>, window_params = [{transform_indices = @transform_0, window_bounds = array<i64: 24>}, {transform_indices = @transform_1, window_bounds = array<i64: 3, 8, 128>}, {transform_indices = @transform_2, window_bounds = array<i64: 1, 8, 128>}]} {
    %c0 = arith.constant 0 : index
    %0 = memref.load %arg1[%c0] : memref<24xf32, #tpu.memory_space<smem>>
    %c1 = arith.constant 1 : index
    %1 = memref.load %arg1[%c1] : memref<24xf32, #tpu.memory_space<smem>>
    %c2 = arith.constant 2 : index
    %2 = memref.load %arg1[%c2] : memref<24xf32, #tpu.memory_space<smem>>
    %c3 = arith.constant 3 : index
    %3 = memref.load %arg1[%c3] : memref<24xf32, #tpu.memory_space<smem>>
    %c4 = arith.constant 4 : index
    %4 = memref.load %arg1[%c4] : memref<24xf32, #tpu.memory_space<smem>>
    %c5 = arith.constant 5 : index
    %5 = memref.load %arg1[%c5] : memref<24xf32, #tpu.memory_space<smem>>
    %c6 = arith.constant 6 : index
    %6 = memref.load %arg1[%c6] : memref<24xf32, #tpu.memory_space<smem>>
    %c7 = arith.constant 7 : index
    %7 = memref.load %arg1[%c7] : memref<24xf32, #tpu.memory_space<smem>>
    %c8 = arith.constant 8 : index
    %8 = memref.load %arg1[%c8] : memref<24xf32, #tpu.memory_space<smem>>
    %c9 = arith.constant 9 : index
    %9 = memref.load %arg1[%c9] : memref<24xf32, #tpu.memory_space<smem>>
    %c10 = arith.constant 10 : index
    %10 = memref.load %arg1[%c10] : memref<24xf32, #tpu.memory_space<smem>>
    %c11 = arith.constant 11 : index
    %11 = memref.load %arg1[%c11] : memref<24xf32, #tpu.memory_space<smem>>
    %c12 = arith.constant 12 : index
    %12 = memref.load %arg1[%c12] : memref<24xf32, #tpu.memory_space<smem>>
    %c13 = arith.constant 13 : index
    %13 = memref.load %arg1[%c13] : memref<24xf32, #tpu.memory_space<smem>>
    %c14 = arith.constant 14 : index
    %14 = memref.load %arg1[%c14] : memref<24xf32, #tpu.memory_space<smem>>
    %c15 = arith.constant 15 : index
    %15 = memref.load %arg1[%c15] : memref<24xf32, #tpu.memory_space<smem>>
    %c16 = arith.constant 16 : index
    %16 = memref.load %arg1[%c16] : memref<24xf32, #tpu.memory_space<smem>>
    %c17 = arith.constant 17 : index
    %17 = memref.load %arg1[%c17] : memref<24xf32, #tpu.memory_space<smem>>
    %c18 = arith.constant 18 : index
    %18 = memref.load %arg1[%c18] : memref<24xf32, #tpu.memory_space<smem>>
    %c19 = arith.constant 19 : index
    %19 = memref.load %arg1[%c19] : memref<24xf32, #tpu.memory_space<smem>>
    %c20 = arith.constant 20 : index
    %20 = memref.load %arg1[%c20] : memref<24xf32, #tpu.memory_space<smem>>
    %c21 = arith.constant 21 : index
    %21 = memref.load %arg1[%c21] : memref<24xf32, #tpu.memory_space<smem>>
    %c22 = arith.constant 22 : index
    %22 = memref.load %arg1[%c22] : memref<24xf32, #tpu.memory_space<smem>>
    %c23 = arith.constant 23 : index
    %23 = memref.load %arg1[%c23] : memref<24xf32, #tpu.memory_space<smem>>
    %24 = tpu.iota {dimensions = array<i32: 0>} : vector<8x128xi32>
    %c128_i32 = arith.constant 128 : i32
    %25 = vector.broadcast %c128_i32 : i32 to vector<8x128xi32>
    %26 = arith.muli %24, %25 : vector<8x128xi32>
    %27 = tpu.iota {dimensions = array<i32: 1>} : vector<8x128xi32>
    %28 = arith.addi %26, %27 : vector<8x128xi32>
    %c1024_i32 = arith.constant 1024 : i32
    %29 = arith.muli %arg0, %c1024_i32 : i32
    %cst = arith.constant 0.000000e+00 : f32
    %30 = vector.broadcast %cst : f32 to vector<8x128xf32>
    %c0_0 = arith.constant 0 : index
    %c0_1 = arith.constant 0 : index
    %c0_2 = arith.constant 0 : index
    %31 = vector.load %arg2[%c0_0, %c0_1, %c0_2] : memref<3x8x128xf32, #tpu.memory_space<vmem>>, vector<1x8x128xf32>
    %32 = vector.shape_cast %31 : vector<1x8x128xf32> to vector<8x128xf32>
    %c1_3 = arith.constant 1 : index
    %c0_4 = arith.constant 0 : index
    %c0_5 = arith.constant 0 : index
    %33 = vector.load %arg2[%c1_3, %c0_4, %c0_5] : memref<3x8x128xf32, #tpu.memory_space<vmem>>, vector<1x8x128xf32>
    %34 = vector.shape_cast %33 : vector<1x8x128xf32> to vector<8x128xf32>
    %c2_6 = arith.constant 2 : index
    %c0_7 = arith.constant 0 : index
    %c0_8 = arith.constant 0 : index
    %35 = vector.load %arg2[%c2_6, %c0_7, %c0_8] : memref<3x8x128xf32, #tpu.memory_space<vmem>>, vector<1x8x128xf32>
    %36 = vector.shape_cast %35 : vector<1x8x128xf32> to vector<8x128xf32>
    %37 = vector.broadcast %0 : f32 to vector<8x128xf32>
    %38 = arith.subf %32, %37 : vector<8x128xf32>
    %39 = vector.broadcast %1 : f32 to vector<8x128xf32>
    %40 = arith.subf %34, %39 : vector<8x128xf32>
    %41 = vector.broadcast %2 : f32 to vector<8x128xf32>
    %42 = arith.subf %36, %41 : vector<8x128xf32>
    %43 = arith.mulf %38, %38 : vector<8x128xf32>
    %44 = arith.mulf %40, %40 : vector<8x128xf32>
    %45 = arith.addf %43, %44 : vector<8x128xf32>
    %46 = arith.mulf %42, %42 : vector<8x128xf32>
    %47 = arith.addf %45, %46 : vector<8x128xf32>
    %48 = vector.broadcast %3 : f32 to vector<8x128xf32>
    %49 = arith.subf %32, %48 : vector<8x128xf32>
    %50 = vector.broadcast %4 : f32 to vector<8x128xf32>
    %51 = arith.subf %34, %50 : vector<8x128xf32>
    %52 = vector.broadcast %5 : f32 to vector<8x128xf32>
    %53 = arith.subf %36, %52 : vector<8x128xf32>
    %54 = arith.mulf %49, %49 : vector<8x128xf32>
    %55 = arith.mulf %51, %51 : vector<8x128xf32>
    %56 = arith.addf %54, %55 : vector<8x128xf32>
    %57 = arith.mulf %53, %53 : vector<8x128xf32>
    %58 = arith.addf %56, %57 : vector<8x128xf32>
    %59 = arith.minimumf %47, %58 : vector<8x128xf32>
    %60 = vector.broadcast %6 : f32 to vector<8x128xf32>
    %61 = arith.subf %32, %60 : vector<8x128xf32>
    %62 = vector.broadcast %7 : f32 to vector<8x128xf32>
    %63 = arith.subf %34, %62 : vector<8x128xf32>
    %64 = vector.broadcast %8 : f32 to vector<8x128xf32>
    %65 = arith.subf %36, %64 : vector<8x128xf32>
    %66 = arith.mulf %61, %61 : vector<8x128xf32>
    %67 = arith.mulf %63, %63 : vector<8x128xf32>
    %68 = arith.addf %66, %67 : vector<8x128xf32>
    %69 = arith.mulf %65, %65 : vector<8x128xf32>
    %70 = arith.addf %68, %69 : vector<8x128xf32>
    %71 = arith.minimumf %59, %70 : vector<8x128xf32>
    %72 = vector.broadcast %9 : f32 to vector<8x128xf32>
    %73 = arith.subf %32, %72 : vector<8x128xf32>
    %74 = vector.broadcast %10 : f32 to vector<8x128xf32>
    %75 = arith.subf %34, %74 : vector<8x128xf32>
    %76 = vector.broadcast %11 : f32 to vector<8x128xf32>
    %77 = arith.subf %36, %76 : vector<8x128xf32>
    %78 = arith.mulf %73, %73 : vector<8x128xf32>
    %79 = arith.mulf %75, %75 : vector<8x128xf32>
    %80 = arith.addf %78, %79 : vector<8x128xf32>
    %81 = arith.mulf %77, %77 : vector<8x128xf32>
    %82 = arith.addf %80, %81 : vector<8x128xf32>
    %83 = arith.minimumf %71, %82 : vector<8x128xf32>
    %84 = vector.broadcast %12 : f32 to vector<8x128xf32>
    %85 = arith.subf %32, %84 : vector<8x128xf32>
    %86 = vector.broadcast %13 : f32 to vector<8x128xf32>
    %87 = arith.subf %34, %86 : vector<8x128xf32>
    %88 = vector.broadcast %14 : f32 to vector<8x128xf32>
    %89 = arith.subf %36, %88 : vector<8x128xf32>
    %90 = arith.mulf %85, %85 : vector<8x128xf32>
    %91 = arith.mulf %87, %87 : vector<8x128xf32>
    %92 = arith.addf %90, %91 : vector<8x128xf32>
    %93 = arith.mulf %89, %89 : vector<8x128xf32>
    %94 = arith.addf %92, %93 : vector<8x128xf32>
    %95 = arith.minimumf %83, %94 : vector<8x128xf32>
    %96 = vector.broadcast %15 : f32 to vector<8x128xf32>
    %97 = arith.subf %32, %96 : vector<8x128xf32>
    %98 = vector.broadcast %16 : f32 to vector<8x128xf32>
    %99 = arith.subf %34, %98 : vector<8x128xf32>
    %100 = vector.broadcast %17 : f32 to vector<8x128xf32>
    %101 = arith.subf %36, %100 : vector<8x128xf32>
    %102 = arith.mulf %97, %97 : vector<8x128xf32>
    %103 = arith.mulf %99, %99 : vector<8x128xf32>
    %104 = arith.addf %102, %103 : vector<8x128xf32>
    %105 = arith.mulf %101, %101 : vector<8x128xf32>
    %106 = arith.addf %104, %105 : vector<8x128xf32>
    %107 = arith.minimumf %95, %106 : vector<8x128xf32>
    %108 = vector.broadcast %18 : f32 to vector<8x128xf32>
    %109 = arith.subf %32, %108 : vector<8x128xf32>
    %110 = vector.broadcast %19 : f32 to vector<8x128xf32>
    %111 = arith.subf %34, %110 : vector<8x128xf32>
    %112 = vector.broadcast %20 : f32 to vector<8x128xf32>
    %113 = arith.subf %36, %112 : vector<8x128xf32>
    %114 = arith.mulf %109, %109 : vector<8x128xf32>
    %115 = arith.mulf %111, %111 : vector<8x128xf32>
    %116 = arith.addf %114, %115 : vector<8x128xf32>
    %117 = arith.mulf %113, %113 : vector<8x128xf32>
    %118 = arith.addf %116, %117 : vector<8x128xf32>
    %119 = arith.minimumf %107, %118 : vector<8x128xf32>
    %120 = vector.broadcast %21 : f32 to vector<8x128xf32>
    %121 = arith.subf %32, %120 : vector<8x128xf32>
    %122 = vector.broadcast %22 : f32 to vector<8x128xf32>
    %123 = arith.subf %34, %122 : vector<8x128xf32>
    %124 = vector.broadcast %23 : f32 to vector<8x128xf32>
    %125 = arith.subf %36, %124 : vector<8x128xf32>
    %126 = arith.mulf %121, %121 : vector<8x128xf32>
    %127 = arith.mulf %123, %123 : vector<8x128xf32>
    %128 = arith.addf %126, %127 : vector<8x128xf32>
    %129 = arith.mulf %125, %125 : vector<8x128xf32>
    %130 = arith.addf %128, %129 : vector<8x128xf32>
    %131 = arith.minimumf %119, %130 : vector<8x128xf32>
    %cst_9 = arith.constant 9.99999997E-7 : f32
    %132 = vector.broadcast %cst_9 : f32 to vector<8x128xf32>
    %133 = arith.addf %131, %132 : vector<8x128xf32>
    %134 = math.sqrt %133 : vector<8x128xf32>
    %c256_i32 = arith.constant 256 : i32
    %135 = arith.subi %c256_i32, %29 : i32
    %136 = vector.broadcast %135 : i32 to vector<8x128xi32>
    %137 = arith.cmpi slt, %28, %136 : vector<8x128xi32>
    %cst_10 = arith.constant 0.000000e+00 : f32
    %138 = vector.broadcast %cst_10 : f32 to vector<8x128xf32>
    %139 = arith.select %137, %134, %138 : vector<8x128xi1>, vector<8x128xf32>
    %140 = arith.addf %30, %139 : vector<8x128xf32>
    %c0_11 = arith.constant 0 : index
    %c0_12 = arith.constant 0 : index
    %c0_13 = arith.constant 0 : index
    %141 = vector.load %arg3[%c0_11, %c0_12, %c0_13] : memref<1x8x128xf32, #tpu.memory_space<vmem>>, vector<1x8x128xf32>
    %142 = vector.shape_cast %141 : vector<1x8x128xf32> to vector<8x128xf32>
    %143 = vector.shape_cast %140 : vector<8x128xf32> to vector<1x8x128xf32>
    tpu.vector_store %arg3[%c0_11, %c0_12, %c0_13], %143 {strides = array<i32>} : memref<1x8x128xf32, #tpu.memory_space<vmem>>, vector<1x8x128xf32>,
    return
  }
  func.func @transform_0(%arg0: i32) -> i32 {
    %c0_i32 = arith.constant 0 : i32
    %c0_i32_0 = arith.constant 0 : i32
    return %c0_i32 : i32
  }
  func.func @transform_1(%arg0: i32) -> (i32, i32, i32) {
    %c0_i32 = arith.constant 0 : i32
    %c0_i32_0 = arith.constant 0 : i32
    %c0_i32_1 = arith.constant 0 : i32
    return %c0_i32, %arg0, %c0_i32_0 : i32, i32, i32
  }
  func.func @transform_2(%arg0: i32) -> (i32, i32, i32) {
    %c0_i32 = arith.constant 0 : i32
    %c0_i32_0 = arith.constant 0 : i32
    %c0_i32_1 = arith.constant 0 : i32
    return %arg0, %c0_i32, %c0_i32_0 : i32, i32, i32
  }
}

</mosaic_0001>

<bundles_post_ra>
// kernel: tpu_custom_call.1
= control target key start
LH: loop header
LB: loop body
LE: loop exit
PB: predicated region body
PF: predicated region fallthrough
CT: control target
= control target key end

     0   :  { %7 = vsyncpa [#allocation5], 0  ;;  %s409_s0 = inlined_call_operand.hbm [shape: f32[24], index: 0, kind: input, shape index: {}]   ;;  %s410_s1 = inlined_call_operand.hbm [shape: f32[3,8,128], index: 1, kind: input, shape index: {}]   ;;  %s411_s2 = inlined_call_operand.hbm [shape: f32[1,8,128], index: 2, kind: output, shape index: {}]  }
   0x1   :  { %8 = vsyncpa [#allocation3], 0 }
   0x2   :  { %9 = vsyncpa [#allocation4], 0  ;;  %s15_s11 = sshll.u32 %s409_s0, 4  ;;  %s23_s14 = sshll.u32 %s410_s1, 4  ;;  %s16_s11 = int_to_ptr.hbm [resolvable:$true] %s15_s11  ;;  %s24_s14 = int_to_ptr.hbm [resolvable:$true] %s23_s14 }
   0x3   :  { %s305_s15 = smov [#allocation2]   ;;  %s306_s16 = smov [#allocation6]  }
   0x4   :  { %18 = dma.hbm_to_smem %s16_s11, 16, %s305_s15, [#allocation5]  }
   0x5   :  { %s25_s17 = sshll.u32 %s306_s16, 4  ;;  %s307_s18 = smov 128   ;;  %s26_s17 = int_to_ptr.vmem [resolvable:$true] %s25_s17 }
   0x6   :  { %s308_s19 = smov 8  }
   0x7   :  { %31 = dma.hbm_to_vmem [thread:$0]  %s24_s14, 384, %s26_s17, [#allocation3], %s307_s18, %s307_s18, %s308_s19  }
   0x8   :  { %299 = dma.done.wait [#allocation5], 16  }
   0x9   :  { %300 = vsyncadd [#allocation5], 4294967280 }
   0xa   :  { %301 = dma.done.wait [#allocation3], 384  }
   0xb   :  { %302 = vsyncadd [#allocation3], 4294966912 }
   0xc   :  { %40 = sfence }
   0xd   :  { %s41_s0 = sld [smem:[#allocation2]]  ;;  %v331_v0 = vld [vmem:[#allocation6] sm:$0xff]  ;;  %v333_v1 = vld [vmem:[#allocation6 + $0x8] sm:$0xff]  ;;  %v335_v2 = vld [vmem:[#allocation6 + $0x10] sm:$0xff]  ;;  %s309_s14 = smov [#allocation7]  }
   0xe   :  { %s209_s20 = sld [smem:[#allocation2 + $0x1]]  ;;  %s196_s15 = sshll.u32 %s309_s14, 4  ;;  %s197_s15 = int_to_ptr.vmem [resolvable:$true] %s196_s15 }
   0xf   :  { %s210_s21 = sld [smem:[#allocation2 + $0x2]]  ;;  %s198_s18 = sshll.u32 %s411_s2, 4  ;;  %s199_s18 = int_to_ptr.hbm [resolvable:$true] %s198_s18 }
  0x10   :  { %s211_s22 = sld [smem:[#allocation2 + $0x3]] }
  0x11   :  { %s212_s23 = sld [smem:[#allocation2 + $0x4]] }
  0x12   :  { %s213_s1 = sld [smem:[#allocation2 + $0x5]] }
  0x13   :  { %s214_s24 = sld [smem:[#allocation2 + $0x6]]  ;;  %v77_v3 = vstv %s41_s0 }
  0x14   :  { %s215_s25 = sld [smem:[#allocation2 + $0x7]]  ;;  %v78_v4 = vsub.f32 %v331_v0, %v77_v3  ;;  %v79_v5 = vstv %s209_s20 }
  0x15   :  { %s338_s26 = sld [smem:[#allocation2 + $0x8]]  ;;  %v80_v6 = vsub.f32 %v333_v1, %v79_v5  ;;  %v81_v7 = vstv %s210_s21 }
  0x16   :  { %s341_s27 = sld [smem:[#allocation2 + $0x9]]  ;;  %v82_v8 = vsub.f32 %v335_v2, %v81_v7  ;;  %v83_v9 = vmul.f32 %v78_v4, %v78_v4  ;;  %v88_v10 = vstv %s211_s22 }
  0x17   :  { %s344_s28 = sld [smem:[#allocation2 + $0xa]]  ;;  %v84_v11 = vmul.f32 %v80_v6, %v80_v6  ;;  %v89_v12 = vsub.f32 %v331_v0, %v88_v10  ;;  %v90_v13 = vstv %s212_s23 }
  0x18   :  { %s347_s29 = sld [smem:[#allocation2 + $0xb]]  ;;  %v86_v14 = vmul.f32 %v82_v8, %v82_v8  ;;  %v91_v15 = vsub.f32 %v333_v1, %v90_v13  ;;  %v92_v16 = vstv %s213_s1 }
  0x19   :  { %s350_s30 = sld [smem:[#allocation2 + $0xc]]  ;;  %v85_v17 = vadd.f32 %v84_v11, %v83_v9  ;;  %v93_v18 = vsub.f32 %v335_v2, %v92_v16  ;;  %v94_v19 = vmul.f32 %v89_v12, %v89_v12  ;;  %v100_v20 = vstv %s214_s24 }
  0x1a   :  { %s353_s3 = sld [smem:[#allocation2 + $0xd]]  ;;  %v95_v21 = vmul.f32 %v91_v15, %v91_v15  ;;  %v101_v22 = vsub.f32 %v331_v0, %v100_v20  ;;  %v102_v23 = vstv %s215_s25 }
  0x1b   :  { %s356_s4 = sld [smem:[#allocation2 + $0xe]]  ;;  %v87_v24 = vadd.f32 %v86_v14, %v85_v17  ;;  %v97_v25 = vmul.f32 %v93_v18, %v93_v18  ;;  %v103_v26 = vsub.f32 %v333_v1, %v102_v23  ;;  %v104_v27 = vstv %s338_s26 }
  0x1c   :  { %s360_s5 = sld [smem:[#allocation2 + $0xf]]  ;;  %v96_v28 = vadd.f32 %v95_v21, %v94_v19  ;;  %v105_v29 = vsub.f32 %v335_v2, %v104_v27  ;;  %v106_v30 = vmul.f32 %v101_v22, %v101_v22  ;;  %v112_v31 = vstv %s341_s27 }
  0x1d   :  { %s364_s6 = sld [smem:[#allocation2 + $0x10]]  ;;  %v107_v32 = vmul.f32 %v103_v26, %v103_v26  ;;  %v113_v33 = vsub.f32 %v331_v0, %v112_v31  ;;  %v114_v34 = vstv %s344_s28 }
  0x1e   :  { %s368_s7 = sld [smem:[#allocation2 + $0x11]]  ;;  %v98_v35 = vadd.f32 %v97_v25, %v96_v28  ;;  %v109_v36 = vmul.f32 %v105_v29, %v105_v29  ;;  %v115_v37 = vsub.f32 %v333_v1, %v114_v34  ;;  %v116_v38 = vstv %s347_s29 }
  0x1f   :  { %s372_s8 = sld [smem:[#allocation2 + $0x12]]  ;;  %v108_v39 = vadd.f32 %v107_v32, %v106_v30  ;;  %v117_v40 = vsub.f32 %v335_v2, %v116_v38  ;;  %v118_v41 = vmul.f32 %v113_v33, %v113_v33  ;;  %v124_v42 = vstv %s350_s30 }
  0x20   :  { %s376_s9 = sld [smem:[#allocation2 + $0x13]]  ;;  %v99_v43 = vmin.f32 %v87_v24, %v98_v35  ;;  %v119_v44 = vmul.f32 %v115_v37, %v115_v37  ;;  %v125_v45 = vsub.f32 %v331_v0, %v124_v42  ;;  %v126_v46 = vstv %s353_s3 }
  0x21   :  { %s380_s10 = sld [smem:[#allocation2 + $0x14]]  ;;  %v110_v47 = vadd.f32 %v109_v36, %v108_v39  ;;  %v121_v48 = vmul.f32 %v117_v40, %v117_v40  ;;  %v127_v49 = vsub.f32 %v333_v1, %v126_v46  ;;  %v128_v50 = vstv %s356_s4 }
  0x22   :  { %s384_s11 = sld [smem:[#allocation2 + $0x15]]  ;;  %v120_v51 = vadd.f32 %v119_v44, %v118_v41  ;;  %v129_v52 = vsub.f32 %v335_v2, %v128_v50  ;;  %v130_v53 = vmul.f32 %v125_v45, %v125_v45  ;;  %v136_v54 = vstv %s360_s5 }
  0x23   :  { %s388_s12 = sld [smem:[#allocation2 + $0x16]]  ;;  %v111_v55 = vmin.f32 %v99_v43, %v110_v47  ;;  %v131_v56 = vmul.f32 %v127_v49, %v127_v49  ;;  %v137_v57 = vsub.f32 %v331_v0, %v136_v54  ;;  %v138_v58 = vstv %s364_s6 }
  0x24   :  { %s231_s13 = sld [smem:[#allocation2 + $0x17]]  ;;  %v122_v59 = vadd.f32 %v121_v48, %v120_v51  ;;  %v133_v60 = vmul.f32 %v129_v52, %v129_v52  ;;  %v139_v61 = vsub.f32 %v333_v1, %v138_v58  ;;  %v140_v62 = vstv %s368_s7 }
  0x25   :  { %v132_v63 = vadd.f32 %v131_v56, %v130_v53  ;;  %v141_v3 = vsub.f32 %v335_v2, %v140_v62  ;;  %v142_v4 = vmul.f32 %v137_v57, %v137_v57  ;;  %v148_v5 = vstv %s372_s8 }
  0x26   :  { %v123_v6 = vmin.f32 %v111_v55, %v122_v59  ;;  %v143_v7 = vmul.f32 %v139_v61, %v139_v61  ;;  %v149_v8 = vsub.f32 %v331_v0, %v148_v5  ;;  %v150_v9 = vstv %s376_s9 }
  0x27   :  { %v134_v10 = vadd.f32 %v133_v60, %v132_v63  ;;  %v145_v11 = vmul.f32 %v141_v3, %v141_v3  ;;  %v151_v12 = vsub.f32 %v333_v1, %v150_v9  ;;  %v152_v13 = vstv %s380_s10 }
  0x28   :  { %v144_v14 = vadd.f32 %v143_v7, %v142_v4  ;;  %v153_v15 = vsub.f32 %v335_v2, %v152_v13  ;;  %v154_v16 = vmul.f32 %v149_v8, %v149_v8  ;;  %v160_v17 = vstv %s384_s11 }
  0x29   :  { %v135_v18 = vmin.f32 %v123_v6, %v134_v10  ;;  %v155_v19 = vmul.f32 %v151_v12, %v151_v12  ;;  %v161_v20 = vsub.f32 %v331_v0, %v160_v17  ;;  %v162_v21 = vstv %s388_s12 }
  0x2a   :  { %v146_v22 = vadd.f32 %v145_v11, %v144_v14  ;;  %v157_v23 = vmul.f32 %v153_v15, %v153_v15  ;;  %v163_v24 = vsub.f32 %v333_v1, %v162_v21  ;;  %v164_v25 = vstv %s231_s13 }
  0x2b   :  { %v156_v26 = vadd.f32 %v155_v19, %v154_v16  ;;  %v165_v27 = vsub.f32 %v335_v2, %v164_v25  ;;  %v166_v28 = vmul.f32 %v161_v20, %v161_v20  ;;  %v65_v0 = vlaneseq }
  0x2c   :  { %v147_v29 = vmin.f32 %v135_v18, %v146_v22  ;;  %v167_v30 = vmul.f32 %v163_v24, %v163_v24 }
  0x2d   :  { %v158_v31 = vadd.f32 %v157_v23, %v156_v26  ;;  %v169_v32 = vmul.f32 %v165_v27, %v165_v27  ;;  %v66_v39 = vshrl.u32 %v65_v0, 7  ;;  %v69_v42 = vand.u32 127, %v65_v0 }
  0x2e   :  { %v168_v33 = vadd.f32 %v167_v30, %v166_v28 }
  0x2f   :  { %v159_v34 = vmin.f32 %v147_v29, %v158_v31  ;;  %v67_v41 = vmul.u32 128, %v66_v39 }
  0x30   :  { %v170_v35 = vadd.f32 %v169_v32, %v168_v33 }
  0x31   :  { %v70_v44 = vadd.s32 %v69_v42, %v67_v41 }
  0x32   :  { %v171_v36 = vmin.f32 %v159_v34, %v170_v35 }
  0x33   :  { %vm187_vm2 = vcmp.lt.s32.totalorder %v70_v44, 256 }
  0x34   :  { %v172_v37 = vadd.f32 1e-06, %v171_v36 }
  0x36   :  { %237 = vrsqrt.f32 %v172_v37  ;;  %vm180_vm0 = vcmp.eq.f32.partialorder %v172_v37, inf  ;;  %v183_v46 = vand.u32 2147483648, %v172_v37  ;;  %vm182_vm1 = vcmp.eq.f32.partialorder %v172_v37, 0.0 }
  0x3c   :  { %v238_v38 = vpop.eup %237 }
  0x3d   :  { %v174_v40 = vmul.f32 %v238_v38, %v172_v37 }
  0x3f   :  { %v175_v1 = vmul.f32 %v238_v38, %v174_v40 }
  0x41   :  { %v176_v43 = vmul.f32 0.5, %v175_v1 }
  0x43   :  { %v177_v2 = vsub.f32 1.5, %v176_v43 }
  0x45   :  { %v178_v45 = vmul.f32 %v238_v38, %v177_v2 }
  0x47   :  { %v179_v47 = vmul.f32 %v178_v45, %v172_v37 }
  0x49   :  { %v181_v48 = vsel %vm180_vm0, %v172_v37, %v179_v47 }
  0x4a   :  { %v184_v49 = vsel %vm182_vm1, %v183_v46, %v181_v48 }
  0x4b   :  { %v188_v50 = vsel %vm187_vm2, %v184_v49, 0.0 }
  0x4c   :  { %190 = vst [vmem:[#allocation7] sm:$0xff] %v188_v50 }
  0x4d   :  { %201 = dma.vmem_to_hbm [thread:$0]  %s197_s15, 128, %s199_s18, [#allocation4]  }
  0x4e   :  { %303 = dma.done.wait [#allocation4], 128  }
  0x4f   :  { %304 = vsyncadd [#allocation4], 4294967168 }
  0x50   :  { %206 = vsyncpa [#allocation3], 1 }
  0x51   :  { %207 = vsyncpa [#allocation4], 1 }
  0x52   :  { %208 = vsyncpa [#allocation5], 1 }

</bundles_post_ra>
